<compile_context>
chip_gen: v7x
topology: tpu7x:2x2x1
jax: 0.10.0
libtpu: 0.0.40
codegen_flags: <defaults>
</compile_context>

<pallas_src>
import functools

import jax
import jax.numpy as jnp
from jax.experimental import pallas as pl
from jax.experimental.pallas import tpu as pltpu


# ---------------------------------------------------------------------------
# Kernels
# ---------------------------------------------------------------------------
def _conv_stats_kernel(w_ref, p_ref, sum_ref, ssq_ref):
    """Pass 1: conv tile (one matmul) + per-channel sum / sum-of-squares.

    w_ref:   (4*Cout, 9*Cin)  folded polyphase weights (resident)
    p_ref:   (9*Cin, TM)      im2col tile, pixels on the lane axis
    sum_ref: (4*Cout, 1)      running per-(phase, channel) sum   (accumulator)
    ssq_ref: (4*Cout, 1)      running per-(phase, channel) sumsq (accumulator)
    """
    @pl.when(pl.program_id(0) == 0)
    def _():
        sum_ref[...] = jnp.zeros_like(sum_ref)
        ssq_ref[...] = jnp.zeros_like(ssq_ref)

    y = jnp.dot(w_ref[...], p_ref[...], preferred_element_type=jnp.float32)
    sum_ref[...] += jnp.sum(y, axis=1, keepdims=True)
    ssq_ref[...] += jnp.sum(y * y, axis=1, keepdims=True)


def _conv_bn_lrelu_kernel(w_ref, p_ref, scale_ref, shift_ref, o_ref):
    """Pass 2: conv tile + fused BatchNorm affine + LeakyReLU(0.2).

    The conv is recomputed (MXU is idle; cheaper than round-tripping the pre-BN
    activation through HBM). Output tile is (4*Cout, TM) with pixels on the
    lane axis, so stores are unmasked / lane-dense.
    """
    y = jnp.dot(w_ref[...], p_ref[...], preferred_element_type=jnp.float32)
    y = y * scale_ref[...] + shift_ref[...]          # fused BatchNorm affine
    y = jnp.where(y >= 0, y, 0.2 * y)                # LeakyReLU(0.2)
    o_ref[...] = y.astype(o_ref.dtype)


# ---------------------------------------------------------------------------
# Wrapper
# ---------------------------------------------------------------------------
@functools.partial(jax.jit, static_argnames=("padding", "scale_factor"))
def upsample_nearest_cblr(x_nchw, w_oihw, bias, gamma, beta,
                          padding=1, scale_factor=2):
    """JAX/Pallas equivalent of UpsampleNearestCBLR.forward (NCHW in/out)."""
    n, cin, h, w = x_nchw.shape
    cout, _, kh, kw = w_oihw.shape
    # TODO(synk): generalize the polyphase fold beyond (k=3, padding=1, scale=2).
    if scale_factor != 2 or (kh, kw) != (3, 3) or padding != 1:
        raise NotImplementedError(
            "Pallas UpsampleNearestCBLR supports kernel_size=3, padding=1, "
            "scale_factor=2 only.")
    del bias  # exactly cancelled by the training-mode BatchNorm mean subtraction

    f32 = jnp.float32
    m_pix = n * h * w          # one "pixel group" (= 2x2 output block) per input pixel
    k_dim = 9 * cin            # im2col contraction size
    c_dim = 4 * cout           # fused (phase_h, phase_w, Cout) channel axis

    # ---- polyphase prep (wrapper-side, ORIGINAL resolution) ------------------
    # A 1-pixel replicate halo on the original input replaces upsample + pad:
    # the 3x3 conv over the 2x nearest-upsampled, pad-1 tensor equals four
    # phase-specific 2x2 convs on the original input; they are folded into one
    # (4*Cout, 9*Cin) weight so a single matmul emits all four phases.
    x_nhwc = jnp.transpose(x_nchw, (0, 2, 3, 1)).astype(f32)
    xp = jnp.pad(x_nhwc, ((0, 0), (1, 1), (1, 1), (0, 0)), mode="edge")

    # im2col at original resolution, K-major / pixel-minor: (9*Cin, N*H*W).
    taps = jnp.stack([xp[:, a:a + h, b:b + w, :]
                      for a in range(3) for b in range(3)], axis=0)
    p_km = jnp.transpose(taps, (0, 4, 1, 2, 3)).reshape(k_dim, m_pix)

    # s_fold[ph, dk, tap]: kernel offset dk hits original-res tap `tap` for
    # output phase ph (phase 0 = even output rows/cols, phase 1 = odd).
    s_fold = jnp.array([[[1, 0, 0], [0, 1, 0], [0, 1, 0]],
                        [[0, 1, 0], [0, 1, 0], [0, 0, 1]]], f32)
    wc = jnp.einsum("pha,qwb,ochw->pqoabc", s_fold, s_fold,
                    w_oihw.astype(f32)).reshape(c_dim, k_dim)

    # ---- tiling over pixels (lane axis) --------------------------------------
    tm = 128 if m_pix % 128 == 0 else m_pix         # lane-dense pixel tiles
    num_tiles = m_pix // tm

    w_spec = pl.BlockSpec((c_dim, k_dim), lambda i: (0, 0))       # resident
    p_spec = pl.BlockSpec((k_dim, tm), lambda i: (0, i))          # pipelined
    vec_spec = pl.BlockSpec((c_dim, 1), lambda i: (0, 0))         # resident
    vmem_cap = 32 * 1024 * 1024                     # well under v7x's 64 MiB

    # ---- pass 1: exact global BatchNorm statistics ---------------------------
    col_sum, col_ssq = pl.pallas_call(
        _conv_stats_kernel,
        out_shape=(jax.ShapeDtypeStruct((c_dim, 1), f32),
                   jax.ShapeDtypeStruct((c_dim, 1), f32)),
        grid_spec=pltpu.PrefetchScalarGridSpec(
            num_scalar_prefetch=0, grid=(num_tiles,),
            in_specs=[w_spec, p_spec],
            out_specs=[vec_spec, vec_spec]),
        compiler_params=pltpu.CompilerParams(
            dimension_semantics=("arbitrary",), vmem_limit_bytes=vmem_cap),
    )(wc, p_km)

    # Pool the 4 phases of each channel -> training-mode (biased) batch stats,
    # then fold mean/var/gamma/beta into one per-column affine (scale, shift).
    count = jnp.asarray(4 * m_pix, f32)             # N * 2H * 2W
    mean = jnp.sum(col_sum.reshape(4, cout), axis=0) / count
    var = jnp.maximum(
        jnp.sum(col_ssq.reshape(4, cout), axis=0) / count - mean * mean, 0.0)
    scale = gamma.astype(f32) * jax.lax.rsqrt(var + 1e-5)
    shift = beta.astype(f32) - mean * scale
    scale_c = jnp.tile(scale, 4).reshape(c_dim, 1)
    shift_c = jnp.tile(shift, 4).reshape(c_dim, 1)

    # ---- pass 2: conv + BN affine + LeakyReLU, lane-dense stores -------------
    out_km = pl.pallas_call(
        _conv_bn_lrelu_kernel,
        out_shape=jax.ShapeDtypeStruct((c_dim, m_pix), x_nchw.dtype),
        grid_spec=pltpu.PrefetchScalarGridSpec(
            num_scalar_prefetch=0, grid=(num_tiles,),
            in_specs=[w_spec, p_spec, vec_spec, vec_spec],
            out_specs=pl.BlockSpec((c_dim, tm), lambda i: (0, i))),
        compiler_params=pltpu.CompilerParams(
            dimension_semantics=("parallel",), vmem_limit_bytes=vmem_cap),
    )(wc, p_km, scale_c, shift_c)

    # ---- interleave phases back to NCHW (wrapper-side layout plumbing) -------
    out = out_km.reshape(2, 2, cout, n, h, w)                 # (ph, pw, o, n, ii, jj)
    out = jnp.transpose(out, (3, 2, 4, 0, 5, 1))              # (n, o, ii, ph, jj, pw)
    return out.reshape(n, cout, 2 * h, 2 * w)


# ---------------------------------------------------------------------------
# Pure-JAX reference (keeps the conv bias, proving it is cancelled by BN)
# ---------------------------------------------------------------------------
def _reference(x_nchw, w_oihw, bias, gamma, beta, padding, scale_factor):
    x = jnp.repeat(x_nchw, scale_factor, axis=2)
    x = jnp.repeat(x, scale_factor, axis=3)
    p = padding
    x = jnp.pad(x, ((0, 0), (0, 0), (p, p), (p, p)), mode="edge")
    y = jax.lax.conv_general_dilated(
        x, w_oihw, window_strides=(1, 1), padding="VALID",
        dimension_numbers=("NCHW", "OIHW", "NCHW"))
    y = y + bias.reshape(1, -1, 1, 1)
    mean = jnp.mean(y, axis=(0, 2, 3), keepdims=True)
    var = jnp.mean((y - mean) ** 2, axis=(0, 2, 3), keepdims=True)
    y = (y - mean) * jax.lax.rsqrt(var + 1e-5)
    y = y * gamma.reshape(1, -1, 1, 1) + beta.reshape(1, -1, 1, 1)
    return jnp.where(y >= 0, y, 0.2 * y)


if __name__ == "__main__":
    # Module config: in_channels=4, out_channels=8, kernel_size=3,
    # padding=1, scale_factor=2.
    N, CIN, COUT, H, W = 2, 4, 8, 16, 16
    KH = KW = 3
    PADDING, SCALE = 1, 2

    key = jax.random.PRNGKey(0)
    kx, kw_, kb, kg, kbe = jax.random.split(key, 5)

    x = jax.random.normal(kx, (N, CIN, H, W), jnp.float32)
    conv_w = jax.random.normal(kw_, (COUT, CIN, KH, KW), jnp.float32) * 0.1
    conv_b = jax.random.normal(kb, (COUT,), jnp.float32) * 0.1
    bn_gamma = 1.0 + 0.1 * jax.random.normal(kg, (COUT,), jnp.float32)
    bn_beta = 0.1 * jax.random.normal(kbe, (COUT,), jnp.float32)

    out = upsample_nearest_cblr(x, conv_w, conv_b, bn_gamma, bn_beta,
                                padding=PADDING, scale_factor=SCALE)
    out = jax.block_until_ready(out)

    assert out.shape == (N, COUT, H * SCALE, W * SCALE), out.shape

    ref = _reference(x, conv_w, conv_b, bn_gamma, bn_beta, PADDING, SCALE)
    max_err = float(jnp.max(jnp.abs(out - ref)))
    assert jnp.allclose(out, ref, atol=2e-3, rtol=2e-3), max_err

    print("KERNEL_OK")
</pallas_src>

<mosaic_0001>
module attributes {stable_mosaic.version = 11 : i64} {
  func.func @_conv_stats_kernel(%arg0: i32, %arg1: memref<32x36xf32, #tpu.memory_space<vmem>>, %arg2: memref<36x128xf32, #tpu.memory_space<vmem>>, %arg3: memref<32x1xf32, #tpu.memory_space<vmem>>, %arg4: memref<32x1xf32, #tpu.memory_space<vmem>>) attributes {dimension_semantics = [#tpu.dimension_semantics<arbitrary>], iteration_bounds = array<i64: 4>, scalar_prefetch = 0 : i64, scratch_operands = 0 : i64, tpu.core_type = #tpu.core_type<tc>, window_params = [{pipeline_mode = #tpu.pipeline_mode<synchronous>, transform_indices = @transform_0, window_bounds = array<i64: 32, 36>}, {transform_indices = @transform_1, window_bounds = array<i64: 36, 128>}, {pipeline_mode = #tpu.pipeline_mode<synchronous>, transform_indices = @transform_2, window_bounds = array<i64: 32, 1>}, {pipeline_mode = #tpu.pipeline_mode<synchronous>, transform_indices = @transform_3, window_bounds = array<i64: 32, 1>}]} {
    %c0_i32 = arith.constant 0 : i32
    %0 = arith.cmpi eq, %arg0, %c0_i32 : i32
    %1 = arith.extui %0 : i1 to i32
    %c0_i32_0 = arith.constant 0 : i32
    %2 = arith.cmpi ne, %1, %c0_i32_0 : i32
    scf.if %2 {
      %cst_14 = arith.constant 0.000000e+00 : f32
      %17 = vector.broadcast %cst_14 : f32 to vector<32x1xf32>
      %c0_15 = arith.constant 0 : index
      %c0_16 = arith.constant 0 : index
      %18 = vector.load %arg3[%c0_15, %c0_16] : memref<32x1xf32, #tpu.memory_space<vmem>>, vector<32x1xf32>
      tpu.vector_store %arg3[%c0_15, %c0_16], %17 {strides = array<i32>} : memref<32x1xf32, #tpu.memory_space<vmem>>, vector<32x1xf32>,
      %cst_17 = arith.constant 0.000000e+00 : f32
      %19 = vector.broadcast %cst_17 : f32 to vector<32x1xf32>
      %c0_18 = arith.constant 0 : index
      %c0_19 = arith.constant 0 : index
      %20 = vector.load %arg4[%c0_18, %c0_19] : memref<32x1xf32, #tpu.memory_space<vmem>>, vector<32x1xf32>
      tpu.vector_store %arg4[%c0_18, %c0_19], %19 {strides = array<i32>} : memref<32x1xf32, #tpu.memory_space<vmem>>, vector<32x1xf32>,
    } else {
    }
    %c0 = arith.constant 0 : index
    %c0_1 = arith.constant 0 : index
    %3 = vector.load %arg1[%c0, %c0_1] : memref<32x36xf32, #tpu.memory_space<vmem>>, vector<32x36xf32>
    %c0_2 = arith.constant 0 : index
    %c0_3 = arith.constant 0 : index
    %4 = vector.load %arg2[%c0_2, %c0_3] : memref<36x128xf32, #tpu.memory_space<vmem>>, vector<36x128xf32>
    %cst = arith.constant dense<0.000000e+00> : vector<32x128xf32>
    %5 = tpu.matmul %3, %4, %cst {dimension_numbers = #tpu.dot_dimension_numbers<[1], [0], [0], [1], [0, 0, 1, 1], [], []>} : vector<32x36xf32>, vector<36x128xf32>, vector<32x128xf32> -> vector<32x128xf32>
    %c0_4 = arith.constant 0 : index
    %c0_5 = arith.constant 0 : index
    %6 = vector.load %arg3[%c0_4, %c0_5] : memref<32x1xf32, #tpu.memory_space<vmem>>, vector<32x1xf32>
    %cst_6 = arith.constant dense<0.000000e+00> : vector<32xf32>
    %7 = vector.multi_reduction <add>, %5, %cst_6 [1] : vector<32x128xf32> to vector<32xf32>
    %8 = vector.shape_cast %7 : vector<32xf32> to vector<32x1xf32>
    %9 = arith.addf %6, %8 : vector<32x1xf32>
    %c0_7 = arith.constant 0 : index
    %c0_8 = arith.constant 0 : index
    %10 = vector.load %arg3[%c0_7, %c0_8] : memref<32x1xf32, #tpu.memory_space<vmem>>, vector<32x1xf32>
    tpu.vector_store %arg3[%c0_7, %c0_8], %9 {strides = array<i32>} : memref<32x1xf32, #tpu.memory_space<vmem>>, vector<32x1xf32>,
    %c0_9 = arith.constant 0 : index
    %c0_10 = arith.constant 0 : index
    %11 = vector.load %arg4[%c0_9, %c0_10] : memref<32x1xf32, #tpu.memory_space<vmem>>, vector<32x1xf32>
    %12 = arith.mulf %5, %5 : vector<32x128xf32>
    %cst_11 = arith.constant dense<0.000000e+00> : vector<32xf32>
    %13 = vector.multi_reduction <add>, %12, %cst_11 [1] : vector<32x128xf32> to vector<32xf32>
    %14 = vector.shape_cast %13 : vector<32xf32> to vector<32x1xf32>
    %15 = arith.addf %11, %14 : vector<32x1xf32>
    %c0_12 = arith.constant 0 : index
    %c0_13 = arith.constant 0 : index
    %16 = vector.load %arg4[%c0_12, %c0_13] : memref<32x1xf32, #tpu.memory_space<vmem>>, vector<32x1xf32>
    tpu.vector_store %arg4[%c0_12, %c0_13], %15 {strides = array<i32>} : memref<32x1xf32, #tpu.memory_space<vmem>>, vector<32x1xf32>,
    return
  }
  func.func @transform_0(%arg0: i32) -> (i32, i32) {
    %c0_i32 = arith.constant 0 : i32
    %c0_i32_0 = arith.constant 0 : i32
    %c0_i32_1 = arith.constant 0 : i32
    return %c0_i32, %c0_i32_0 : i32, i32
  }
  func.func @transform_1(%arg0: i32) -> (i32, i32) {
    %c0_i32 = arith.constant 0 : i32
    %c0_i32_0 = arith.constant 0 : i32
    return %c0_i32, %arg0 : i32, i32
  }
  func.func @transform_2(%arg0: i32) -> (i32, i32) {
    %c0_i32 = arith.constant 0 : i32
    %c0_i32_0 = arith.constant 0 : i32
    %c0_i32_1 = arith.constant 0 : i32
    return %c0_i32, %c0_i32_0 : i32, i32
  }
  func.func @transform_3(%arg0: i32) -> (i32, i32) {
    %c0_i32 = arith.constant 0 : i32
    %c0_i32_0 = arith.constant 0 : i32
    %c0_i32_1 = arith.constant 0 : i32
    return %c0_i32, %c0_i32_0 : i32, i32
  }
}

module attributes {stable_mosaic.version = 11 : i64} {
  func.func @_conv_bn_lrelu_kernel(%arg0: i32, %arg1: memref<32x36xf32, #tpu.memory_space<vmem>>, %arg2: memref<36x128xf32, #tpu.memory_space<vmem>>, %arg3: memref<32x1xf32, #tpu.memory_space<vmem>>, %arg4: memref<32x1xf32, #tpu.memory_space<vmem>>, %arg5: memref<32x128xf32, #tpu.memory_space<vmem>>) attributes {dimension_semantics = [#tpu.dimension_semantics<parallel>], iteration_bounds = array<i64: 4>, scalar_prefetch = 0 : i64, scratch_operands = 0 : i64, tpu.core_type = #tpu.core_type<tc>, window_params = [{pipeline_mode = #tpu.pipeline_mode<synchronous>, transform_indices = @transform_0, window_bounds = array<i64: 32, 36>}, {transform_indices = @transform_1, window_bounds = array<i64: 36, 128>}, {pipeline_mode = #tpu.pipeline_mode<synchronous>, transform_indices = @transform_2, window_bounds = array<i64: 32, 1>}, {pipeline_mode = #tpu.pipeline_mode<synchronous>, transform_indices = @transform_3, window_bounds = array<i64: 32, 1>}, {transform_indices = @transform_4, window_bounds = array<i64: 32, 128>}]} {
    %c0 = arith.constant 0 : index
    %c0_0 = arith.constant 0 : index
    %0 = vector.load %arg1[%c0, %c0_0] : memref<32x36xf32, #tpu.memory_space<vmem>>, vector<32x36xf32>
    %c0_1 = arith.constant 0 : index
    %c0_2 = arith.constant 0 : index
    %1 = vector.load %arg2[%c0_1, %c0_2] : memref<36x128xf32, #tpu.memory_space<vmem>>, vector<36x128xf32>
    %cst = arith.constant dense<0.000000e+00> : vector<32x128xf32>
    %2 = tpu.matmul %0, %1, %cst {dimension_numbers = #tpu.dot_dimension_numbers<[1], [0], [0], [1], [0, 0, 1, 1], [], []>} : vector<32x36xf32>, vector<36x128xf32>, vector<32x128xf32> -> vector<32x128xf32>
    %c0_3 = arith.constant 0 : index
    %c0_4 = arith.constant 0 : index
    %3 = vector.load %arg3[%c0_3, %c0_4] : memref<32x1xf32, #tpu.memory_space<vmem>>, vector<32x1xf32>
    %4 = vector.broadcast %3 : vector<32x1xf32> to vector<32x128xf32>
    %5 = arith.mulf %2, %4 : vector<32x128xf32>
    %c0_5 = arith.constant 0 : index
    %c0_6 = arith.constant 0 : index
    %6 = vector.load %arg4[%c0_5, %c0_6] : memref<32x1xf32, #tpu.memory_space<vmem>>, vector<32x1xf32>
    %7 = vector.broadcast %6 : vector<32x1xf32> to vector<32x128xf32>
    %8 = arith.addf %5, %7 : vector<32x128xf32>
    %cst_7 = arith.constant 0.000000e+00 : f32
    %9 = vector.broadcast %cst_7 : f32 to vector<32x128xf32>
    %10 = arith.cmpf oge, %8, %9 : vector<32x128xf32>
    %cst_8 = arith.constant 2.000000e-01 : f32
    %11 = vector.broadcast %cst_8 : f32 to vector<32x128xf32>
    %12 = arith.mulf %11, %8 : vector<32x128xf32>
    %13 = arith.select %10, %8, %12 : vector<32x128xi1>, vector<32x128xf32>
    %c0_9 = arith.constant 0 : index
    %c0_10 = arith.constant 0 : index
    %14 = vector.load %arg5[%c0_9, %c0_10] : memref<32x128xf32, #tpu.memory_space<vmem>>, vector<32x128xf32>
    tpu.vector_store %arg5[%c0_9, %c0_10], %13 {strides = array<i32>} : memref<32x128xf32, #tpu.memory_space<vmem>>, vector<32x128xf32>,
    return
  }
  func.func @transform_0(%arg0: i32) -> (i32, i32) {
    %c0_i32 = arith.constant 0 : i32
    %c0_i32_0 = arith.constant 0 : i32
    %c0_i32_1 = arith.constant 0 : i32
    return %c0_i32, %c0_i32_0 : i32, i32
  }
  func.func @transform_1(%arg0: i32) -> (i32, i32) {
    %c0_i32 = arith.constant 0 : i32
    %c0_i32_0 = arith.constant 0 : i32
    return %c0_i32, %arg0 : i32, i32
  }
  func.func @transform_2(%arg0: i32) -> (i32, i32) {
    %c0_i32 = arith.constant 0 : i32
    %c0_i32_0 = arith.constant 0 : i32
    %c0_i32_1 = arith.constant 0 : i32
    return %c0_i32, %c0_i32_0 : i32, i32
  }
  func.func @transform_3(%arg0: i32) -> (i32, i32) {
    %c0_i32 = arith.constant 0 : i32
    %c0_i32_0 = arith.constant 0 : i32
    %c0_i32_1 = arith.constant 0 : i32
    return %c0_i32, %c0_i32_0 : i32, i32
  }
  func.func @transform_4(%arg0: i32) -> (i32, i32) {
    %c0_i32 = arith.constant 0 : i32
    %c0_i32_0 = arith.constant 0 : i32
    return %c0_i32, %arg0 : i32, i32
  }
}

</mosaic_0001>

<bundles_post_ra>
// kernel: tile.18
= control target key start
LH: loop header
LB: loop body
LE: loop exit
PB: predicated region body
PF: predicated region fallthrough
CT: control target
= control target key end

     0   :  { %s22_s0 = inlined_call_operand.vmem [shape: f32[8], index: 0, kind: input, shape index: {}]   ;;  %s23_s1 = inlined_call_operand.vmem [shape: f32[4,8], index: 1, kind: output, shape index: {}]  }
   0x1   :  { %v4_v0 = vld [vmem:[%s22_s0] ss:$0 sm:$0xff] }
   0x2   :  { %5 = vst [vmem:[%s23_s1] sm:$0xf] %v4_v0 }

// kernel: tile.0
= control target key start
LH: loop header
LB: loop body
LE: loop exit
PB: predicated region body
PF: predicated region fallthrough
CT: control target
= control target key end

     0   :  { %s66_s8 = smov 125   ;;  %vm7_vm0 = vcmask 7168   ;;  %s67_s11 = smov 126   ;;  %s117_s0 = inlined_call_operand.vmem [shape: f32[4,8], index: 0, kind: input, shape index: {}]   ;;  %s118_s1 = inlined_call_operand.vmem [shape: f32[32,1], index: 1, kind: output, shape index: {}]  }
   0x1   :  { %v4_v0 = vld [vmem:[%s117_s0] sm:$0xf]  ;;  %s65_s0 = smov 127   ;;  %s68_s12 = smov 124  }
   0x2   :  { %5 = vst [vmem:[#allocation0] sm:$0xf] %v4_v0  ;;  %s69_s13 = smov 123   ;;  %s70_s14 = smov 122  }
   0x3   :  { %s71_s15 = smov 121  }
   0x9   :  { %v9_v1 = vld [vmem:[#allocation0] sm:$0xf]  }
   0xa   :  { %v21_v2 = vld [vmem:[#allocation0] sm:$0xf]   ;;  %10 = vrot.lane.b32.xlu0 %v9_v1, %s65_s0 }
   0xb   :  { %22 = vrot.lane.b32.xlu1 %v21_v2, %s66_s8  ;;  %v15_v3 = vld [vmem:[#allocation0] sm:$0xf]  }
   0xc   :  { %v27_v4 = vld [vmem:[#allocation0] sm:$0xf]  }
   0xd   :  { %v6_v5 = vld [vmem:[#allocation0] sm:$0xf]  }
   0xe   :  { %8 = vst.msk [vmem:[%s118_s1] ss:$8 sm:$0xf] %vm7_vm0, %v6_v5   ;;  %16 = vrot.lane.b32.xlu0 %v15_v3, %s67_s11  ;;  %v33_v6 = vld [vmem:[#allocation0] sm:$0xf]  }
   0xf   :  { %28 = vrot.lane.b32.xlu1 %v27_v4, %s68_s12  ;;  %v39_v7 = vld [vmem:[#allocation0] sm:$0xf]  }
  0x10   :  { %v45_v8 = vld [vmem:[#allocation0] sm:$0xf]  }
  0x12   :  { %34 = vrot.lane.b32.xlu0 %v33_v6, %s69_s13 }
  0x13   :  { %40 = vrot.lane.b32.xlu1 %v39_v7, %s70_s14 }
  0x16   :  { %46 = vrot.lane.b32.xlu0 %v45_v8, %s71_s15 }
  0x7c   :  { %v11_v9 = vpop.permute.xlu0 %10  }
  0x7d   :  { %v23_v10 = vpop.permute.xlu1 %22   ;;  %51 = vst.msk [vmem:[%s118_s1 + $0x1] ss:$8 sm:$0xf] %vm7_vm0, %v11_v9  }
  0x7e   :  { %53 = vst.msk [vmem:[%s118_s1 + $0x3] ss:$8 sm:$0xf] %vm7_vm0, %v23_v10  }
  0x80   :  { %v17_v11 = vpop.permute.xlu0 %16  }
  0x81   :  { %v29_v12 = vpop.permute.xlu1 %28   ;;  %52 = vst.msk [vmem:[%s118_s1 + $0x2] ss:$8 sm:$0xf] %vm7_vm0, %v17_v11  }
  0x82   :  { %54 = vst.msk [vmem:[%s118_s1 + $0x4] ss:$8 sm:$0xf] %vm7_vm0, %v29_v12  }
  0x84   :  { %v35_v13 = vpop.permute.xlu0 %34  }
  0x85   :  { %v41_v14 = vpop.permute.xlu1 %40   ;;  %55 = vst.msk [vmem:[%s118_s1 + $0x5] ss:$8 sm:$0xf] %vm7_vm0, %v35_v13  }
  0x86   :  { %56 = vst.msk [vmem:[%s118_s1 + $0x6] ss:$8 sm:$0xf] %vm7_vm0, %v41_v14  }
  0x88   :  { %v47_v15 = vpop.permute.xlu0 %46  }
  0x89   :  { %57 = vst.msk [vmem:[%s118_s1 + $0x7] ss:$8 sm:$0xf] %vm7_vm0, %v47_v15  }

// kernel: upsample_nearest_cblr.2
= control target key start
LH: loop header
LB: loop body
LE: loop exit
PB: predicated region body
PF: predicated region fallthrough
CT: control target
= control target key end

     0   :  { %s537_s12 = smov 0   ;;  %s539_s13 = smov 0   ;;  %s682_s0 = inlined_call_operand.vmem [shape: f32[32,36], index: 0, kind: input, shape index: {}]   ;;  %s683_s1 = inlined_call_operand.vmem [shape: f32[36,512], index: 1, kind: input, shape index: {}]   ;;  %s684_s2 = inlined_call_operand.vmem [shape: f32[32,1], index: 2, kind: output, shape index: {0}]   ;;  %s685_s3 = inlined_call_operand.vmem [shape: f32[32,1], index: 3, kind: output, shape index: {1}]  }
   0x1   :  { %s541_s14 = smov 0  }
   0x2 LB: > { %s413_s15 = sadd.s32 4294967295, %s514_s14   ;;  %s554_s16 = sadd.s32 1, %s514_s14   ;;  %s514_s14 = sphi %s541_s14, %s688_s14   ;;  %s510_s13 = sphi %s539_s13, %s687_s13   ;;  %s506_s12 = sphi %s537_s12, %s686_s12  }
   0x3   : > { %s39_s17 = ssub.s32 %s514_s14, %s554_s16  ;;  %s42_s18 = sadd.s32 1, %s510_s13 }
   0x4   : > { %p40_p0 = scmp.eq.s32.totalorder %s39_s17, 0  ;;  %p49_p1 = scmp.ne.s32.totalorder %s510_s13, %s506_s12 }
   0x5   : > { %p50_p2 = scmp.eq.s32.totalorder %s514_s14, 0  ;;  %p415_p4 = scmp.ge.s32.totalorder %s514_s14, 4 }
   0x6   : > { %s563_s19 = scalar_select %p40_p0, %s510_s13, %s42_s18  }
   0x7   : > { %p51_p3 = por %p50_p2, %p49_p1  ;;  %120 = sbr.rel (%p415_p4) target bundleno = 23 (0x17), region = 20 }
   0xe   : > { %123 = sbr.rel (!%p51_p3) target bundleno = 23 (0x17), region = 24  ;;  %s125_s20 = sand.u32 (%p51_p3), 1, %s510_s13  }
   0xf   : > { %s416_s21 = sshll.u32 (%p51_p3), %s514_s14, 3  ;;  %s465_s22 = smul.u32 (%p51_p3), 40, %s125_s20 }
  0x10   : > { %s129_s25 = scalar_lea.vmem (%p51_p3), %s683_s1, %s416_s21 }
  0x11   : > { %v165_v0 = vld [vmem:[%s129_s25] sm:$0xff] (%p51_p3)  ;;  %s127_s26 = scalar_lea.vmem (%p51_p3), [#allocation2], %s465_s22 }
  0x12   : > { %v167_v1 = vld [vmem:[%s129_s25 + $0x20] sm:$0xff] (%p51_p3)  ;;  %166 = vst [vmem:[%s127_s26] sm:$0xff] (%p51_p3), %v165_v0 }
  0x13   : > { %v169_v2 = vld [vmem:[%s129_s25 + $0x40] sm:$0xff] (%p51_p3)  ;;  %168 = vst [vmem:[%s127_s26 + $0x8] sm:$0xff] (%p51_p3), %v167_v1 }
  0x14   : > { %v171_v3 = vld [vmem:[%s129_s25 + $0x60] sm:$0xff] (%p51_p3)  ;;  %170 = vst [vmem:[%s127_s26 + $0x10] sm:$0xff] (%p51_p3), %v169_v2 }
  0x15   : > { %v173_v4 = vld [vmem:[%s129_s25 + $0x80] sm:$0xff]  ;;  %172 = vst [vmem:[%s127_s26 + $0x18] sm:$0xff] %v171_v3 }
  0x16   : > { %174 = vst [vmem:[%s127_s26 + $0x20] sm:$0xff] %v173_v4 }
  0x17 PF: > { %p417_p5 = scmp.ge.s32.totalorder %s514_s14, 1  ;;  %p179_p6 = scmp.lt.s32.totalorder %s514_s14, 5 }
  0x19   : > { %p180_p7 = pnand %p417_p5, %p179_p6 }
  0x1a   : > { %s186_s27 = sand.u32 (!%p180_p7), 1, %s506_s12   ;;  %p418_p8 = scmp.ne.s32.totalorder (!%p180_p7), %s413_s15, 0 }
  0x1b   : > { %183 = sbr.rel (%p180_p7) target bundleno = 424 (0x1a8), region = 62 }
  0x1c   : > { %s466_s28 = smul.u32 (!%p180_p7), 40, %s186_s27 }
  0x1e   : > { %s188_s29 = scalar_lea.vmem (!%p180_p7), [#allocation2], %s466_s28 }
  0x22   : > { %207 = sbr.rel (%p418_p8) target bundleno = 41 (0x29), region = 70  ;;  %vm208_vm0 = vcmask (!%p418_p8), 7168   ;;  %v516_v5 = vmov (!%p418_p8), 0.0  }
  0x23   : > { %209 = vst.msk [vmem:[%s684_s2] sm:$0xff] (!%p418_p8), %vm208_vm0, %v516_v5  ;;  %210 = vst.msk [vmem:[%s684_s2 + $0x8] sm:$0xff] (!%p418_p8), %vm208_vm0, %v516_v5 }
  0x24   : > { %211 = vst.msk [vmem:[%s684_s2 + $0x10] sm:$0xff] (!%p418_p8), %vm208_vm0, %v516_v5  ;;  %212 = vst.msk [vmem:[%s684_s2 + $0x18] sm:$0xff] (!%p418_p8), %vm208_vm0, %v516_v5 }
  0x25   : > { %213 = vst.msk [vmem:[%s685_s3] sm:$0xff] (!%p418_p8), %vm208_vm0, %v516_v5  ;;  %214 = vst.msk [vmem:[%s685_s3 + $0x8] sm:$0xff] (!%p418_p8), %vm208_vm0, %v516_v5 }
  0x26   : > { %215 = vst.msk [vmem:[%s685_s3 + $0x10] sm:$0xff] (!%p418_p8), %vm208_vm0, %v516_v5  ;;  %216 = vst.msk [vmem:[%s685_s3 + $0x18] sm:$0xff] (!%p418_p8), %vm208_vm0, %v516_v5 }
  0x29 PF: > { %v221_v6 = vld [vmem:[%s188_s29] sm:$0xff]  ;;  %v222_v7 = vld [vmem:[%s188_s29 + $0x8] sm:$0xff]  ;;  %v223_v8 = vld [vmem:[%s188_s29 + $0x10] sm:$0xff]  ;;  %vm226_vm1 = vcmask 293888   ;;  %vm239_vm2 = vcmask 1043456   ;;  %vm344_vm3 = vcmask 7168  }
  0x2a   : > { %v451_v9 = vpack.c.bf16 %v222_v7, %v221_v6  ;;  %v224_v10 = vld [vmem:[%s188_s29 + $0x18] sm:$0xff]  ;;  %v219_v13 = vld [vmem:[%s682_s0 + $0x10] sm:$0xff]  ;;  %v225_v14 = vld [vmem:[%s188_s29 + $0x20] sm:$0xf] }
  0x2b   : > { %v217_v11 = vld [vmem:[%s682_s0] sm:$0xff]  ;;  %v455_v12 = vpack.c.bf16 %v224_v10, %v223_v8  ;;  %448 = vmatprep.mubr.msk.f32.mxu1 %vm226_vm1, %v219_v13  ;;  %v218_v15 = vld [vmem:[%s682_s0 + $0x8] sm:$0xff]  ;;  %v220_v16 = vld [vmem:[%s682_s0 + $0x18] sm:$0xff] }
  0x2c   : > { %445 = vmatprep.mubr.msk.f32.mxu0 %vm226_vm1, %v217_v11  ;;  %452 = vmatprep.subr.bf16.mxu0 %v451_v9  ;;  %v331_v25 = vld [vmem:[%s684_s2 + $0x18] sm:$0xff]  ;;  %v329_v26 = vld [vmem:[%s684_s2 + $0x8] sm:$0xff]  ;;  %v330_v31 = vld [vmem:[%s684_s2 + $0x10] sm:$0xff] }
  0x2d   : > { %459 = vmatprep.subr.bf16.mxu1 %v451_v9  ;;  %454 = vmatpush3.bf16.msra.mxu0 %v451_v9  ;;  %v328_v32 = vld [vmem:[%s684_s2] sm:$0xff]  ;;  %v350_v37 = vld [vmem:[%s685_s3 + $0x8] sm:$0xff]  ;;  %v352_v43 = vld [vmem:[%s685_s3 + $0x18] sm:$0xff] }
  0x2e   : > { %462 = vmatpush3.bf16.msra.mxu1 %v451_v9  ;;  %456 = vmatprep.subr.bf16.mxu0 %v455_v12  ;;  %v349_v38 = vld [vmem:[%s685_s3] sm:$0xff]  ;;  %v351_v44 = vld [vmem:[%s685_s3 + $0x10] sm:$0xff] }
  0x2f   : > { %460 = vmatprep.subr.bf16.mxu1 %v455_v12 }
  0x31   : > { %458 = vmatpush3.bf16.msra.mxu0 %v455_v12 }
  0x32   : > { %463 = vmatpush3.bf16.msra.mxu1 %v455_v12  ;;  %443 = vmatprep.subr.msk.mxu0 %vm239_vm2, %v225_v14 }
  0x33   : > { %461 = vmatprep.subr.msk.mxu1 %vm239_vm2, %v225_v14 }
  0x35   : > { %444 = vmatpush3.msk.msra.mxu0 %vm239_vm2, %v225_v14 }
  0x36   : > { %464 = vmatpush3.msk.msra.mxu1 %vm239_vm2, %v225_v14  ;;  %446 = vmatmul.mubr.msk.f32.vlgmr.msra.gmra.mrb[0].mxu0 %vm226_vm1, %v218_v15 }
  0x37   : > { %449 = vmatmul.mubr.msk.f32.vlgmr.msra.gmra.mrb[0].mxu1 %vm226_vm1, %v220_v16 }
 0x109   : > { %v447_v17 = vpop.f32.mrb[0].mxu0 }
 0x10a   : > { %v450_v18 = vpop.f32.mrb[0].mxu1  ;;  %334 = vadd.xlane.f32.xlu0 %v447_v17  ;;  %v309_v20 = vpop.f32.mrb[1].mxu0  ;;  %v354_v22 = vmul.f32 %v447_v17, %v447_v17 }
 0x10b   : > { %338 = vadd.xlane.f32.xlu1 %v450_v18  ;;  %v319_v19 = vpop.f32.mrb[1].mxu1  ;;  %v353_v21 = vmul.f32 %v309_v20, %v309_v20  ;;  %v356_v24 = vmul.f32 %v450_v18, %v450_v18 }
 0x10c   : > { %v355_v23 = vmul.f32 %v319_v19, %v319_v19 }
 0x10e   : > { %332 = vadd.xlane.f32.xlu0 %v309_v20 }
 0x10f   : > { %336 = vadd.xlane.f32.xlu1 %v319_v19 }
 0x112   : > { %357 = vadd.xlane.f32.xlu0 %v353_v21 }
 0x113   : > { %359 = vadd.xlane.f32.xlu1 %v354_v22 }
 0x116   : > { %361 = vadd.xlane.f32.xlu0 %v355_v23 }
 0x117   : > { %363 = vadd.xlane.f32.xlu1 %v356_v24 }
 0x197   : > { %v335_v28 = vpop.xlane.xlu0 %334 }
 0x198   : > { %v339_v27 = vpop.xlane.xlu1 %338  ;;  %v341_v30 = vadd.f32 %v335_v28, %v329_v26 }
 0x199   : > { %v343_v29 = vadd.f32 %v339_v27, %v331_v25 }
 0x19a   : > { %346 = vst.msk [vmem:[%s684_s2 + $0x8] sm:$0xff] %vm344_vm3, %v341_v30 }
 0x19b   : > { %348 = vst.msk [vmem:[%s684_s2 + $0x18] sm:$0xff] %vm344_vm3, %v343_v29  ;;  %v333_v34 = vpop.xlane.xlu0 %332 }
 0x19c   : > { %v337_v33 = vpop.xlane.xlu1 %336  ;;  %v340_v36 = vadd.f32 %v333_v34, %v328_v32 }
 0x19d   : > { %v342_v35 = vadd.f32 %v337_v33, %v330_v31 }
 0x19e   : > { %345 = vst.msk [vmem:[%s684_s2] sm:$0xff] %vm344_vm3, %v340_v36 }
 0x19f   : > { %347 = vst.msk [vmem:[%s684_s2 + $0x10] sm:$0xff] %vm344_vm3, %v342_v35  ;;  %v358_v40 = vpop.xlane.xlu0 %357 }
 0x1a0   : > { %v360_v39 = vpop.xlane.xlu1 %359  ;;  %v365_v42 = vadd.f32 %v358_v40, %v349_v38 }
 0x1a1   : > { %v366_v41 = vadd.f32 %v360_v39, %v350_v37 }
 0x1a2   : > { %369 = vst.msk [vmem:[%s685_s3] sm:$0xff] %vm344_vm3, %v365_v42 }
 0x1a3   : > { %370 = vst.msk [vmem:[%s685_s3 + $0x8] sm:$0xff] %vm344_vm3, %v366_v41  ;;  %v362_v46 = vpop.xlane.xlu0 %361 }
 0x1a4   : > { %v364_v45 = vpop.xlane.xlu1 %363  ;;  %v367_v48 = vadd.f32 %v362_v46, %v351_v44 }
 0x1a5   : > { %v368_v47 = vadd.f32 %v364_v45, %v352_v43 }
 0x1a6   : > { %371 = vst.msk [vmem:[%s685_s3 + $0x10] sm:$0xff] %vm344_vm3, %v367_v48 }
 0x1a7   : > { %372 = vst.msk [vmem:[%s685_s3 + $0x18] sm:$0xff] %vm344_vm3, %v368_v47 }
 0x1a8 PF: > { %p11_p9 = scmp.ge.s32.totalorder %s554_s16, 6   ;;  %s686_s12 = smov %s510_s13 }
 0x1a9   : > { %s687_s13 = smov %s563_s19  ;;  %s688_s14 = smov %s554_s16 }
 0x1aa   :  { %13 = sbr.rel (!%p11_p9) target bundleno = 2 (0x2), region = 109 }

// kernel: upsample_nearest_cblr.3
= control target key start
LH: loop header
LB: loop body
LE: loop exit
PB: predicated region body
PF: predicated region fallthrough
CT: control target
= control target key end

     0   :  { %s668_s15 = smov 0   ;;  %s670_s16 = smov 0   ;;  %s776_s0 = inlined_call_operand.vmem [shape: f32[32,36], index: 0, kind: input, shape index: {}]   ;;  %s777_s1 = inlined_call_operand.vmem [shape: f32[36,512], index: 1, kind: input, shape index: {}]   ;;  %s778_s2 = inlined_call_operand.vmem [shape: f32[32,1], index: 2, kind: input, shape index: {}]   ;;  %s779_s3 = inlined_call_operand.vmem [shape: f32[32,1], index: 3, kind: input, shape index: {}]   ;;  %s780_s4 = inlined_call_operand.vmem [shape: f32[32,512], index: 4, kind: output, shape index: {}]  }
   0x1   :  { %s672_s17 = smov 0  }
   0x2 LB: > { %s534_s18 = sadd.s32 4294967295, %s640_s17   ;;  %s685_s19 = sadd.s32 1, %s640_s17   ;;  %s640_s17 = sphi %s672_s17, %s784_s17   ;;  %s636_s16 = sphi %s670_s16, %s783_s16   ;;  %s632_s15 = sphi %s668_s15, %s782_s15  }
   0x3   : > { %s39_s20 = ssub.s32 %s640_s17, %s685_s19  ;;  %s42_s21 = sadd.s32 1, %s636_s16 }
   0x4   : > { %p40_p0 = scmp.eq.s32.totalorder %s39_s20, 0  ;;  %p49_p1 = scmp.ne.s32.totalorder %s636_s16, %s632_s15 }
   0x5   : > { %p50_p2 = scmp.eq.s32.totalorder %s640_s17, 0  ;;  %p121_p3 = scmp.eq.s32.totalorder %s534_s18, 3 }
   0x6   : > { %s696_s22 = scalar_select %p40_p0, %s636_s16, %s42_s21  }
   0x7   : > { %p51_p4 = por %p50_p2, %p49_p1  ;;  %p698_p5 = por %p121_p3, %p49_p1 }
   0x8   : > { %p537_p6 = scmp.ge.s32.totalorder %s640_s17, 4 }
   0xa   : > { %152 = sbr.rel (%p537_p6) target bundleno = 26 (0x1a), region = 28 }
  0x11   : > { %155 = sbr.rel (!%p51_p4) target bundleno = 26 (0x1a), region = 32  ;;  %s157_s24 = sand.u32 (%p51_p4), 1, %s636_s16  }
  0x12   : > { %s538_s25 = sshll.u32 (%p51_p4), %s640_s17, 3  ;;  %s589_s26 = smul.u32 (%p51_p4), 40, %s157_s24 }
  0x13   : > { %s161_s29 = scalar_lea.vmem (%p51_p4), %s777_s1, %s538_s25 }
  0x14   : > { %v197_v0 = vld [vmem:[%s161_s29] sm:$0xff] (%p51_p4)  ;;  %s159_s30 = scalar_lea.vmem (%p51_p4), [#allocation2], %s589_s26 }
  0x15   : > { %v199_v1 = vld [vmem:[%s161_s29 + $0x20] sm:$0xff] (%p51_p4)  ;;  %198 = vst [vmem:[%s159_s30] sm:$0xff] (%p51_p4), %v197_v0 }
  0x16   : > { %v201_v2 = vld [vmem:[%s161_s29 + $0x40] sm:$0xff] (%p51_p4)  ;;  %200 = vst [vmem:[%s159_s30 + $0x8] sm:$0xff] (%p51_p4), %v199_v1 }
  0x17   : > { %v203_v3 = vld [vmem:[%s161_s29 + $0x60] sm:$0xff] (%p51_p4)  ;;  %202 = vst [vmem:[%s159_s30 + $0x10] sm:$0xff] (%p51_p4), %v201_v2 }
  0x18   : > { %v205_v4 = vld [vmem:[%s161_s29 + $0x80] sm:$0xff]  ;;  %204 = vst [vmem:[%s159_s30 + $0x18] sm:$0xff] %v203_v3 }
  0x19   : > { %206 = vst [vmem:[%s159_s30 + $0x20] sm:$0xff] %v205_v4 }
  0x1a PF: > { %p539_p7 = scmp.ge.s32.totalorder %s640_s17, 1  ;;  %p211_p8 = scmp.lt.s32.totalorder %s640_s17, 5 }
  0x1c   : > { %p212_p9 = pnand %p539_p7, %p211_p8 }
  0x1d   : > { %s218_s5 = sand.u32 (!%p212_p9), 1, %s632_s15   ;;  %v242_v5 = vld [vmem:[%s776_s0] sm:$0xff] (!%p212_p9)  ;;  %vm251_vm0 = vcmask (!%p212_p9), 293888   ;;  %v244_v6 = vld [vmem:[%s776_s0 + $0x10] sm:$0xff] (!%p212_p9)  ;;  %v642_v9 = vmov (!%p212_p9), 0   ;;  %v356_v16 = vld [vmem:[%s778_s2 + $0x18] sm:$0xff] (!%p212_p9) }
  0x1e   : > { %215 = sbr.rel (%p212_p9) target bundleno = 276 (0x114), region = 70  ;;  %569 = vmatprep.mubr.msk.f32.mxu0 (!%p212_p9), %vm251_vm0, %v242_v5  ;;  %572 = vmatprep.mubr.msk.f32.mxu1 (!%p212_p9), %vm251_vm0, %v244_v6  ;;  %v355_v7 = vld [vmem:[%s778_s2 + $0x10] sm:$0xff] (!%p212_p9)  ;;  %v353_v8 = vld [vmem:[%s778_s2] sm:$0xff] (!%p212_p9)  ;;  %v354_v17 = vld [vmem:[%s778_s2 + $0x8] sm:$0xff] (!%p212_p9)  ;;  %vm264_vm1 = vcmask (!%p212_p9), 1043456   ;;  %s540_s14 = sshll.u32 (!%p212_p9), %s218_s5, 5 }
  0x1f   : > { %s590_s10 = smul.u32 (!%p212_p9), 40, %s218_s5  ;;  %617 = vset.pattern.permute.xlu1 (!%p212_p9), %v642_v9  ;;  %616 = vset.pattern.permute.xlu0 (!%p212_p9), %v642_v9  ;;  %v382_v19 = vld [vmem:[%s779_s3 + $0x8] sm:$0xff] (!%p212_p9)  ;;  %v381_v20 = vld [vmem:[%s779_s3] sm:$0xff] (!%p212_p9)  ;;  %v245_v22 = vld [vmem:[%s776_s0 + $0x18] sm:$0xff] (!%p212_p9)  ;;  %s241_s15 = scalar_lea.vmem (!%p212_p9), [#allocation3], %s540_s14 }
  0x20   : > { %369 = vperm.xlu1 (!%p212_p9), %617, %v355_v7   ;;  %359 = vperm.xlu0 (!%p212_p9), %616, %v353_v8   ;;  %v243_v21 = vld [vmem:[%s776_s0 + $0x8] sm:$0xff] (!%p212_p9)  ;;  %v384_v23 = vld [vmem:[%s779_s3 + $0x18] sm:$0xff] (!%p212_p9)  ;;  %v383_v24 = vld [vmem:[%s779_s3 + $0x10] sm:$0xff] (!%p212_p9) }
  0x21   : > { %s220_s20 = scalar_lea.vmem (!%p212_p9), [#allocation2], %s590_s10 }
  0x22   : > { %v246_v10 = vld [vmem:[%s220_s20] sm:$0xff] (!%p212_p9)  ;;  %v247_v11 = vld [vmem:[%s220_s20 + $0x8] sm:$0xff] (!%p212_p9)  ;;  %v248_v12 = vld [vmem:[%s220_s20 + $0x10] sm:$0xff] (!%p212_p9) }
  0x23   : > { %v575_v13 = vpack.c.bf16 (!%p212_p9), %v247_v11, %v246_v10  ;;  %v249_v14 = vld [vmem:[%s220_s20 + $0x18] sm:$0xff] (!%p212_p9)  ;;  %v250_v18 = vld [vmem:[%s220_s20 + $0x20] sm:$0xf] (!%p212_p9) }
  0x24   : > { %v579_v15 = vpack.c.bf16 (!%p212_p9), %v249_v14, %v248_v12  ;;  %374 = vperm.xlu1 (!%p212_p9), %617, %v356_v16   ;;  %364 = vperm.xlu0 (!%p212_p9), %616, %v354_v17  }
  0x25   : > { %576 = vmatprep.subr.bf16.mxu0 %v575_v13  ;;  %583 = vmatprep.subr.bf16.mxu1 %v575_v13  ;;  %s547_s5 = sshll.u32 (%p698_p5), %s534_s18, 3 }
  0x26   : > { %578 = vmatpush3.bf16.msra.mxu0 %v575_v13  ;;  %586 = vmatpush3.bf16.msra.mxu1 %v575_v13  ;;  %s433_s24 = scalar_lea.vmem (%p698_p5), %s780_s4, %s547_s5 }
  0x27   : > { %580 = vmatprep.subr.bf16.mxu0 %v579_v15  ;;  %584 = vmatprep.subr.bf16.mxu1 %v579_v15 }
  0x28   : > { %392 = vperm.xlu1 %617, %v382_v19   ;;  %387 = vperm.xlu0 %616, %v381_v20  }
  0x2a   : > { %582 = vmatpush3.bf16.msra.mxu0 %v579_v15  ;;  %587 = vmatpush3.bf16.msra.mxu1 %v579_v15 }
  0x2b   : > { %567 = vmatprep.subr.msk.mxu0 %vm264_vm1, %v250_v18  ;;  %585 = vmatprep.subr.msk.mxu1 %vm264_vm1, %v250_v18 }
  0x2c   : > { %402 = vperm.xlu1 %617, %v384_v23   ;;  %397 = vperm.xlu0 %616, %v383_v24  }
  0x2e   : > { %568 = vmatpush3.msk.msra.mxu0 %vm264_vm1, %v250_v18  ;;  %588 = vmatpush3.msk.msra.mxu1 %vm264_vm1, %v250_v18 }
  0x2f   : > { %570 = vmatmul.mubr.msk.f32.vlgmr.msra.gmra.mrb[0].mxu0 %vm251_vm0, %v243_v21  ;;  %573 = vmatmul.mubr.msk.f32.vlgmr.msra.gmra.mrb[0].mxu1 %vm251_vm0, %v245_v22 }
  0x9f   : > { %v370_v25 = vpop.permute.xlu1 %369  ;;  %v360_v26 = vpop.permute.xlu0 %359 }
  0xa3   : > { %v375_v27 = vpop.permute.xlu1 %374  ;;  %v365_v28 = vpop.permute.xlu0 %364 }
  0xa7   : > { %v393_v29 = vpop.permute.xlu1 %392  ;;  %v388_v30 = vpop.permute.xlu0 %387 }
  0xab   : > { %v403_v37 = vpop.permute.xlu1 %402  ;;  %v398_v40 = vpop.permute.xlu0 %397 }
 0x102   : > { %v571_v31 = vpop.f32.mrb[0].mxu0  ;;  %v574_v32 = vpop.f32.mrb[0].mxu1 }
 0x103   : > { %v378_v33 = vmul.f32 %v571_v31, %v365_v28  ;;  %v380_v34 = vmul.f32 %v574_v32, %v375_v27  ;;  %v334_v35 = vpop.f32.mrb[1].mxu0  ;;  %v344_v36 = vpop.f32.mrb[1].mxu1 }
 0x104   : > { %v377_v38 = vmul.f32 %v360_v26, %v334_v35  ;;  %v379_v39 = vmul.f32 %v370_v25, %v344_v36 }
 0x105   : > { %v406_v41 = vadd.f32 %v393_v29, %v378_v33  ;;  %v408_v42 = vadd.f32 %v403_v37, %v380_v34  ;;  %431 = sbr.rel (!%p698_p5) target bundleno = 276 (0x114), region = 78 }
 0x106   : > { %v405_v43 = vadd.f32 %v388_v30, %v377_v38  ;;  %v407_v44 = vadd.f32 %v398_v40, %v379_v39 }
 0x107   : > { %vm410_vm2 = vcmp.ge.f32.partialorder %v406_v41, 0.0  ;;  %v414_v45 = vmul.f32 0.2, %v406_v41  ;;  %vm412_vm3 = vcmp.ge.f32.partialorder %v408_v42, 0.0  ;;  %v416_v46 = vmul.f32 0.2, %v408_v42 }
 0x108   : > { %vm409_vm4 = vcmp.ge.f32.partialorder %v405_v43, 0.0  ;;  %v413_v47 = vmul.f32 0.2, %v405_v43  ;;  %vm411_vm5 = vcmp.ge.f32.partialorder %v407_v44, 0.0  ;;  %v415_v48 = vmul.f32 0.2, %v407_v44 }
 0x109   : > { %v418_v49 = vsel %vm410_vm2, %v406_v41, %v414_v45  ;;  %v420_v50 = vsel %vm412_vm3, %v408_v42, %v416_v46 }
 0x10a   : > { %422 = vst [vmem:[%s241_s15 + $0x8] sm:$0xff] %v418_v49  ;;  %424 = vst [vmem:[%s241_s15 + $0x18] sm:$0xff] %v420_v50  ;;  %v417_v51 = vsel %vm409_vm4, %v405_v43, %v413_v47  ;;  %v419_v52 = vsel %vm411_vm5, %v407_v44, %v415_v48 }
 0x10b   : > { %421 = vst [vmem:[%s241_s15] sm:$0xff] %v417_v51  ;;  %423 = vst [vmem:[%s241_s15 + $0x10] sm:$0xff] %v419_v52 }
 0x111   : > { %v469_v54 = vld [vmem:[%s241_s15 + $0x8] sm:$0xff]  ;;  %v473_v56 = vld [vmem:[%s241_s15 + $0x18] sm:$0xff] }
 0x112   : > { %v467_v53 = vld [vmem:[%s241_s15] sm:$0xff]  ;;  %v471_v55 = vld [vmem:[%s241_s15 + $0x10] sm:$0xff]  ;;  %470 = vst [vmem:[%s433_s24 + $0x20] sm:$0xff] %v469_v54  ;;  %474 = vst [vmem:[%s433_s24 + $0x60] sm:$0xff] %v473_v56 }
 0x113   : > { %468 = vst [vmem:[%s433_s24] sm:$0xff] %v467_v53  ;;  %472 = vst [vmem:[%s433_s24 + $0x40] sm:$0xff] %v471_v55 }
 0x114 PF: > { %p11_p10 = scmp.ge.s32.totalorder %s685_s19, 6   ;;  %s782_s15 = smov %s636_s16 }
 0x115   : > { %s783_s16 = smov %s696_s22  ;;  %s784_s17 = smov %s685_s19 }
 0x116   :  { %13 = sbr.rel (!%p11_p10) target bundleno = 2 (0x2), region = 147 }

</bundles_post_ra>
